<compile_context>
chip_gen: v7x
topology: tpu7x:2x2x1
jax: 0.10.0
libtpu: 0.0.40
codegen_flags: <defaults>
</compile_context>

<pallas_src>
import functools
import math

import jax
import jax.numpy as jnp
from jax.experimental import pallas as pl
from jax.experimental.pallas import tpu as pltpu

BN_EPS = 1e-3
LANE = 128
ACT_DTYPE = jnp.bfloat16          # inter-kernel activation storage dtype


def _tpu_vmem_capacity():
    try:
        return int(pltpu.get_tpu_info().vmem_capacity_bytes)
    except Exception:
        return 64 * 1024 * 1024   # conservative fallback (v7x-sized)


_VMEM_CAP = _tpu_vmem_capacity()
# generation-aware scoped-VMEM limit and spatial tile target
VMEM_LIMIT_BYTES = min((_VMEM_CAP * 3) // 4, 96 * 1024 * 1024)
M_TILE_TARGET = 512 if _VMEM_CAP >= 96 * 1024 * 1024 else 256


# ---------------------------------------------------------------------------
# small helpers
# ---------------------------------------------------------------------------
def _rup(c, m=LANE):
    """Round channel count up to a multiple of the lane width (128)."""
    return ((c + m - 1) // m) * m


def _pick_tile_m(m, target):
    """Largest tile <= target that divides m (multiple of 8), else the full dim."""
    if m <= target:
        return m
    t = (target // 8) * 8
    while t >= 8:
        if m % t == 0:
            return t
        t -= 8
    return m


def _cparams(*sem):
    return pltpu.CompilerParams(dimension_semantics=sem,
                                vmem_limit_bytes=VMEM_LIMIT_BYTES)


def _sigmoid(y):
    # exact sigmoid in f32; exp goes to the EUP slot (v5e has no bf16 VPU/EUP, so the
    # whole epilogue stays f32).
    return 1.0 / (1.0 + jnp.exp(-y))


# ---------------------------------------------------------------------------
# Pallas kernels
# ---------------------------------------------------------------------------
def _pw_kernel(x_ref, w_ref, scale_ref, shift_ref, *rest, act, has_gate, has_res):
    """Fused pointwise conv: y = act((x * gate?) @ w * scale + shift) + residual?."""
    idx = 0
    g_ref = None
    r_ref = None
    if has_gate:
        g_ref = rest[idx]
        idx += 1
    if has_res:
        r_ref = rest[idx]
        idx += 1
    o_ref = rest[idx]

    x = x_ref[0]                                        # (T, Cin), bf16 activations
    if has_gate:
        # per-batch SE gate (1, Cin), f32 multiply then back to bf16 for the MXU
        x = (x.astype(jnp.float32) * g_ref[...]).astype(jnp.bfloat16)
    y = jnp.dot(x.astype(jnp.bfloat16), w_ref[...],     # bf16 MXU, f32 accumulate
                preferred_element_type=jnp.float32)
    y = y * scale_ref[...] + shift_ref[...]             # folded BN / bias (f32)
    if act == "swish":
        y = y * _sigmoid(y)
    elif act == "sigmoid":
        y = _sigmoid(y)
    if has_res:
        y = y + r_ref[0].astype(jnp.float32)            # fused residual add (f32)
    o_ref[0] = y.astype(o_ref.dtype)                    # bf16 store


def pointwise(x, w, scale, shift, act="none", gate=None, residual=None):
    """1x1 conv (+ optional SE gate + BN/bias + activation + residual) on NHWC input."""
    N, H, W, Cin = x.shape
    Cout = w.shape[1]
    HW = H * W
    T = _pick_tile_m(HW, M_TILE_TARGET)
    x3 = x.reshape(N, HW, Cin)

    args = [x3, w, scale.reshape(1, Cout), shift.reshape(1, Cout)]
    in_specs = [
        pl.BlockSpec((1, T, Cin), lambda n, t: (n, t, 0)),
        pl.BlockSpec((Cin, Cout), lambda n, t: (0, 0)),
        pl.BlockSpec((1, Cout), lambda n, t: (0, 0)),
        pl.BlockSpec((1, Cout), lambda n, t: (0, 0)),
    ]
    if gate is not None:
        args.append(gate)                                              # (N, Cin) f32
        in_specs.append(pl.BlockSpec((1, Cin), lambda n, t: (n, 0)))
    if residual is not None:
        args.append(residual.reshape(N, HW, Cout))                     # bf16
        in_specs.append(pl.BlockSpec((1, T, Cout), lambda n, t: (n, t, 0)))

    y = pl.pallas_call(
        functools.partial(_pw_kernel, act=act,
                          has_gate=gate is not None, has_res=residual is not None),
        out_shape=jax.ShapeDtypeStruct((N, HW, Cout), ACT_DTYPE),
        grid=(N, HW // T),
        in_specs=in_specs,
        out_specs=pl.BlockSpec((1, T, Cout), lambda n, t: (n, t, 0)),
        compiler_params=_cparams("parallel", "parallel"),
    )(*args)
    return y.reshape(N, H, W, Cout)


def _dw_kernel(x_ref, w_ref, scale_ref, shift_ref, o_ref, pool_ref, *,
               ksize, stride, inv_hw):
    """Depthwise conv (stride folded into input phases) + BN + Swish + fused SE pool."""
    _, Ho, Wo, CT = o_ref.shape
    w = w_ref[...]                                      # (k, k, CT) f32
    xall = x_ref[0].astype(jnp.float32)                 # (P, Hph, Wph, CT), one upcast
    acc = None                                          # value-resident accumulation
    for kh in range(ksize):
        for kw in range(ksize):
            p = (kh % stride) * stride + (kw % stride)  # phase index
            oh, ow = kh // stride, kw // stride
            xs = xall[p, oh:oh + Ho, ow:ow + Wo, :]
            term = xs * w[kh, kw]
            acc = term if acc is None else acc + term
    y = acc * scale_ref[...] + shift_ref[...]
    y = y * _sigmoid(y)                                 # Swish
    o_ref[0] = y.astype(o_ref.dtype)
    # fused SE global-average-pool over this channel tile (no extra HBM read later)
    s = jnp.sum(y, axis=0)                              # (Wo, CT)
    pool_ref[...] = jnp.sum(s, axis=0, keepdims=True) * inv_hw


def depthwise_conv_bn_swish(x, w, scale, shift, ksize, stride):
    """Returns (activation bf16 (N,Ho,Wo,C), SE-pooled f32 (N,C))."""
    N, H, W, C = x.shape
    pad = ksize // 2
    Ho = (H + 2 * pad - ksize) // stride + 1
    Wo = (W + 2 * pad - ksize) // stride + 1
    xp = jnp.pad(x, ((0, 0), (pad, pad), (pad, pad), (0, 0))) if pad else x

    if stride == 1:
        xph = xp[:, None]                               # (N, 1, Hp, Wp, C)
        P = 1
    else:
        # phase-decompose the padded input so the kernel computes only the strided
        # outputs with plain stride-1 slices.
        # TODO(synk): express the stride-2 taps with strided in-kernel loads to avoid
        # this extra HBM round trip on the two stride-2 blocks.
        s = stride
        hph = -(-xp.shape[1] // s)
        wph = -(-xp.shape[2] // s)
        parts = []
        for a in range(s):
            for b in range(s):
                ph = xp[:, a::s, b::s, :]
                ph = jnp.pad(ph, ((0, 0), (0, hph - ph.shape[1]),
                                  (0, wph - ph.shape[2]), (0, 0)))
                parts.append(ph)
        xph = jnp.stack(parts, axis=1)                  # (N, s*s, hph, wph, C)
        P = s * s

    _, _, Hph, Wph, _ = xph.shape
    CT = LANE if C % LANE == 0 else C                   # channel tile (depthwise is
    grid = (N, C // CT)                                 # channel-independent: no halo)

    act, pooled = pl.pallas_call(
        functools.partial(_dw_kernel, ksize=ksize, stride=stride,
                          inv_hw=1.0 / float(Ho * Wo)),
        out_shape=(jax.ShapeDtypeStruct((N, Ho, Wo, C), ACT_DTYPE),
                   jax.ShapeDtypeStruct((N, C), jnp.float32)),
        grid=grid,
        in_specs=[
            pl.BlockSpec((1, P, Hph, Wph, CT), lambda n, c: (n, 0, 0, 0, c)),
            pl.BlockSpec((ksize, ksize, CT), lambda n, c: (0, 0, c)),
            pl.BlockSpec((1, CT), lambda n, c: (0, c)),
            pl.BlockSpec((1, CT), lambda n, c: (0, c)),
        ],
        out_specs=[pl.BlockSpec((1, Ho, Wo, CT), lambda n, c: (n, 0, 0, c)),
                   pl.BlockSpec((1, CT), lambda n, c: (n, c))],
        compiler_params=_cparams("parallel", "parallel"),
    )(xph, w, scale.reshape(1, C), shift.reshape(1, C))
    return act, pooled


def _se_fc_kernel(p_ref, w1_ref, b1_ref, w2_ref, b2_ref, o_ref):
    """SE excitation on the pre-pooled vector: fc1 + swish + fc2 + sigmoid -> gate."""
    t = jnp.dot(p_ref[...].astype(jnp.bfloat16), w1_ref[...],
                preferred_element_type=jnp.float32) + b1_ref[...]
    t = t * _sigmoid(t)                                 # Swish
    g = jnp.dot(t.astype(jnp.bfloat16), w2_ref[...],
                preferred_element_type=jnp.float32) + b2_ref[...]
    o_ref[...] = _sigmoid(g)


def se_gate(pooled, w1, b1, w2, b2):
    N, C = pooled.shape
    S = w1.shape[1]
    return pl.pallas_call(
        _se_fc_kernel,
        out_shape=jax.ShapeDtypeStruct((N, C), jnp.float32),
        grid=(1,),
        in_specs=[
            pl.BlockSpec((N, C), lambda i: (0, 0)),
            pl.BlockSpec((C, S), lambda i: (0, 0)),
            pl.BlockSpec((1, S), lambda i: (0, 0)),
            pl.BlockSpec((S, C), lambda i: (0, 0)),
            pl.BlockSpec((1, C), lambda i: (0, 0)),
        ],
        out_specs=pl.BlockSpec((N, C), lambda i: (0, 0)),
        compiler_params=_cparams("arbitrary"),
    )(pooled, w1, b1.reshape(1, S), w2, b2.reshape(1, C))


def _head_pool_kernel(x_ref, w_ref, scale_ref, shift_ref, o_ref, acc_ref, *, inv_hw):
    """Fused head 1x1 conv + BN + Swish + global average pool (accumulated over t)."""
    t = pl.program_id(1)

    @pl.when(t == 0)
    def _():
        acc_ref[...] = jnp.zeros_like(acc_ref)

    y = jnp.dot(x_ref[0].astype(jnp.bfloat16), w_ref[...],
                preferred_element_type=jnp.float32)
    y = y * scale_ref[...] + shift_ref[...]
    y = y * _sigmoid(y)                                 # Swish
    acc_ref[...] += jnp.sum(y, axis=0, keepdims=True)

    @pl.when(t == pl.num_programs(1) - 1)
    def _():
        o_ref[...] = acc_ref[...] * inv_hw


def head_conv_pool(x, w, scale, shift):
    """Head conv + pool; only the (N, F) pooled features ever hit HBM."""
    N, H, W, Cin = x.shape
    F = w.shape[1]
    HW = H * W
    T = _pick_tile_m(HW, M_TILE_TARGET)
    x3 = x.reshape(N, HW, Cin)
    return pl.pallas_call(
        functools.partial(_head_pool_kernel, inv_hw=1.0 / float(HW)),
        out_shape=jax.ShapeDtypeStruct((N, F), jnp.float32),
        grid=(N, HW // T),
        in_specs=[
            pl.BlockSpec((1, T, Cin), lambda n, t: (n, t, 0)),
            pl.BlockSpec((Cin, F), lambda n, t: (0, 0)),
            pl.BlockSpec((1, F), lambda n, t: (0, 0)),
            pl.BlockSpec((1, F), lambda n, t: (0, 0)),
        ],
        out_specs=pl.BlockSpec((1, F), lambda n, t: (n, 0)),
        scratch_shapes=[pltpu.VMEM((1, F), jnp.float32)],
        compiler_params=_cparams("parallel", "arbitrary"),
    )(x3, w, scale.reshape(1, F), shift.reshape(1, F))


# ---------------------------------------------------------------------------
# Composite ops (XLA glue + Pallas)
# ---------------------------------------------------------------------------
def stem_conv3x3_bn_swish(x, w, scale, shift):
    # 3x3 / stride 1 / pad 1 stem as im2col + the fused pointwise kernel.  K stays 27
    # (no lane padding of a materialized tensor) and patches are stored in bf16, so the
    # HBM round trip is ~9.5x smaller than a lane-padded f32 version.
    # TODO(synk): build the 9 shifted taps inside a Pallas kernel to avoid materializing
    # the patches tensor in HBM entirely.
    N, H, W, Cin = x.shape
    k = 3
    xp = jnp.pad(x, ((0, 0), (1, 1), (1, 1), (0, 0)))
    cols = [xp[:, kh:kh + H, kw:kw + W, :] for kh in range(k) for kw in range(k)]
    patches = jnp.concatenate(cols, axis=-1).astype(ACT_DTYPE)   # (N, H, W, 27)
    return pointwise(patches, w, scale, shift, act="swish")


# ---------------------------------------------------------------------------
# Parameter construction (deterministic, mirrors module __init__ + .c() init)
# ---------------------------------------------------------------------------
CONFIG = [
    [32, 16, 3, 1, 1, 0.25, 1],
    [16, 24, 3, 1, 6, 0.25, 2],
    [24, 40, 3, 2, 6, 0.25, 2],
    [40, 80, 3, 1, 6, 0.25, 3],
    [80, 112, 3, 2, 6, 0.25, 3],
    [112, 192, 3, 1, 6, 0.25, 1],
    [192, 192, 1, 1, 18, 0.25, 1],
    [192, 320, 3, 1, 6, 0.25, 1],
]


def _round_channels(c, divisor=8, min_value=None):
    if min_value is None:
        min_value = divisor
    new_c = max(min_value, int(c + divisor / 2) // divisor * divisor)
    if new_c < 0.9 * c:
        new_c += divisor
    return new_c


def _bn_fold(c_real, c_pad):
    # fresh BatchNorm (gamma=1, beta=0, mean=0, var=1), eval mode; padded channels -> 0
    scale = jnp.zeros((c_pad,), jnp.float32).at[:c_real].set(1.0 / math.sqrt(1.0 + BN_EPS))
    shift = jnp.zeros((c_pad,), jnp.float32)
    return scale, shift


def _conv_init(key, shape, fan_out):
    # matches m.weight.data.normal_(0, sqrt(2/n)) with n = kh*kw*out_channels
    return jax.random.normal(key, shape, jnp.float32) * math.sqrt(2.0 / fan_out)


def _pad_mat(w, rows, cols):
    r, c = w.shape
    return jnp.pad(w, ((0, rows - r), (0, cols - c)))


def make_mbconv(key, in_ch, out_ch, ksize, stride, expand_ratio, se_ratio):
    exp_ch = in_ch * expand_ratio
    sq = int(in_ch * se_ratio)
    in_p, out_p, exp_p = _rup(in_ch), _rup(out_ch), _rup(exp_ch)
    sq_p = _rup(max(sq, 1))

    p = {"in_ch": in_ch, "out_ch": out_ch, "ksize": ksize, "stride": stride,
         "expand_ratio": expand_ratio, "se_ratio": se_ratio,
         "in_p": in_p, "out_p": out_p, "exp_p": exp_p}
    ks = jax.random.split(key, 5)

    if expand_ratio != 1:
        w = _conv_init(ks[0], (in_ch, exp_ch), exp_ch)
        p["exp_w"] = _pad_mat(w, in_p, exp_p).astype(jnp.bfloat16)
        p["exp_scale"], p["exp_shift"] = _bn_fold(exp_ch, exp_p)

    wdw = _conv_init(ks[1], (ksize, ksize, exp_ch), ksize * ksize * exp_ch)
    p["dw_w"] = jnp.pad(wdw, ((0, 0), (0, 0), (0, exp_p - exp_ch)))
    p["dw_scale"], p["dw_shift"] = _bn_fold(exp_ch, exp_p)

    if se_ratio != 0.0:
        w1 = _conv_init(ks[2], (exp_ch, sq), sq)
        p["se_w1"] = _pad_mat(w1, exp_p, sq_p).astype(jnp.bfloat16)
        p["se_b1"] = jnp.zeros((sq_p,), jnp.float32)
        w2 = _conv_init(ks[3], (sq, exp_ch), exp_ch)
        p["se_w2"] = _pad_mat(w2, sq_p, exp_p).astype(jnp.bfloat16)
        p["se_b2"] = jnp.zeros((exp_p,), jnp.float32)

    wp = _conv_init(ks[4], (exp_ch, out_ch), out_ch)
    p["proj_w"] = _pad_mat(wp, exp_p, out_p).astype(jnp.bfloat16)
    p["proj_scale"], p["proj_shift"] = _bn_fold(out_ch, out_p)
    return p


def build_params(key, compress_rate, param, stem_channels=32, feature_size=1280):
    width, depth = param[0], param[1]
    config = [list(c) for c in CONFIG]
    if width != 1.0:
        stem_channels = _round_channels(stem_channels * width)
        for conf in config:
            conf[0] = _round_channels(conf[0] * width)
            conf[1] = _round_channels(conf[1] * width)
    if depth != 1.0:
        for conf in config:
            conf[6] = int(math.ceil(conf[6] * depth))

    kcnt = [0]

    def nk():
        kcnt[0] += 1
        return jax.random.fold_in(key, kcnt[0])

    params = {}
    stem_p = _rup(stem_channels)
    w = _conv_init(nk(), (3, 3, 3, stem_channels), 3 * 3 * stem_channels)
    # K stays 27 (no 27->128 padding of the materialized patches tensor)
    params["stem_w"] = _pad_mat(w.reshape(27, stem_channels), 27, stem_p).astype(jnp.bfloat16)
    params["stem_scale"], params["stem_shift"] = _bn_fold(stem_channels, stem_p)

    blocks = []
    cnt = 1
    in_ch = stem_channels
    for ii, (_, out_c0, ksize, stride, expand, se_ratio, repeats) in enumerate(config):
        out_c = int((1 - compress_rate[cnt]) * out_c0)
        if ii == 6:
            # TODO(synk): Adapter_MBConvBlock is not defined in the reference source;
            # MBConvBlock semantics are used for this block.
            blocks.append(make_mbconv(nk(), in_ch, out_c, ksize, stride, expand, se_ratio))
            in_ch = out_c
        else:
            for i in range(repeats):
                ic = in_ch if i == 0 else out_c
                s = stride if i == 0 else 1
                blocks.append(make_mbconv(nk(), ic, out_c, ksize, s, expand, se_ratio))
                in_ch = out_c
        cnt += 1
    params["blocks"] = blocks

    in_p = _rup(in_ch)
    wh = _conv_init(nk(), (in_ch, feature_size), feature_size)
    params["head_w"] = _pad_mat(wh, in_p, feature_size).astype(jnp.bfloat16)
    params["head_scale"], params["head_shift"] = _bn_fold(feature_size, feature_size)
    return params


# ---------------------------------------------------------------------------
# Forward pass
# ---------------------------------------------------------------------------
def mbconv_forward(p, x):
    h = x
    if p["expand_ratio"] != 1:
        h = pointwise(h, p["exp_w"], p["exp_scale"], p["exp_shift"], act="swish")
    h, pooled = depthwise_conv_bn_swish(h, p["dw_w"], p["dw_scale"], p["dw_shift"],
                                        p["ksize"], p["stride"])
    gate = None
    if p["se_ratio"] != 0.0:
        gate = se_gate(pooled, p["se_w1"], p["se_b1"], p["se_w2"], p["se_b2"])
    # residual condition uses the *real* channel counts (torch semantics);
    # _DropPath is identity at inference (training=False)
    residual = x if (p["stride"] == 1 and p["in_ch"] == p["out_ch"]) else None
    h = pointwise(h, p["proj_w"], p["proj_scale"], p["proj_shift"],
                  act="none", gate=gate, residual=residual)
    return h


def efficientnet_forward(params, x_nchw):
    # torch NCHW input -> NHWC kernel layout
    x = jnp.transpose(x_nchw.astype(jnp.float32), (0, 2, 3, 1))
    x = stem_conv3x3_bn_swish(x, params["stem_w"], params["stem_scale"], params["stem_shift"])
    for bp in params["blocks"]:
        x = mbconv_forward(bp, x)
    # head 1x1 conv + BN + Swish + torch.mean(x, (2, 3)) fused into one kernel
    feats = head_conv_pool(x, params["head_w"], params["head_scale"], params["head_shift"])
    # nn.Dropout is identity at inference time; classifier Linear is not applied in forward()
    return feats                        # (N, feature_size) f32


# ---------------------------------------------------------------------------
if __name__ == "__main__":
    key = jax.random.PRNGKey(0)
    k_param, k_input = jax.random.split(key)

    compress_rate = [0.0] * 9                 # no pruning -> canonical channel counts
    param = (1.0, 1.0, 16, 0.2)               # (width, depth, input_size, dropout)

    params = build_params(k_param, compress_rate, param)

    # small NCHW image batch, consistent with the 3-channel stem conv
    x = jax.random.normal(k_input, (2, 3, 16, 16), jnp.float32)

    out = efficientnet_forward(params, x)
    out = jax.block_until_ready(out)
    assert out.shape == (2, 1280)
    assert bool(jnp.all(jnp.isfinite(out)))
    print("KERNEL_OK")
</pallas_src>

<mosaic_0001>
module attributes {stable_mosaic.version = 11 : i64} {
  func.func @_pw_kernel(%arg0: i32, %arg1: i32, %arg2: memref<1x256x27xbf16, #tpu.memory_space<vmem>>, %arg3: memref<27x128xbf16, #tpu.memory_space<vmem>>, %arg4: memref<1x128xf32, #tpu.memory_space<vmem>>, %arg5: memref<1x128xf32, #tpu.memory_space<vmem>>, %arg6: memref<1x256x128xbf16, #tpu.memory_space<vmem>>) attributes {dimension_semantics = [#tpu.dimension_semantics<parallel>, #tpu.dimension_semantics<parallel>], iteration_bounds = array<i64: 2, 1>, scalar_prefetch = 0 : i64, scratch_operands = 0 : i64, tpu.core_type = #tpu.core_type<tc>, window_params = [{transform_indices = @transform_0, window_bounds = array<i64: 1, 256, 27>}, {pipeline_mode = #tpu.pipeline_mode<synchronous>, transform_indices = @transform_1, window_bounds = array<i64: 27, 128>}, {pipeline_mode = #tpu.pipeline_mode<synchronous>, transform_indices = @transform_2, window_bounds = array<i64: 1, 128>}, {pipeline_mode = #tpu.pipeline_mode<synchronous>, transform_indices = @transform_3, window_bounds = array<i64: 1, 128>}, {transform_indices = @transform_4, window_bounds = array<i64: 1, 256, 128>}]} {
    %c0 = arith.constant 0 : index
    %c0_0 = arith.constant 0 : index
    %c0_1 = arith.constant 0 : index
    %0 = vector.load %arg2[%c0, %c0_0, %c0_1] : memref<1x256x27xbf16, #tpu.memory_space<vmem>>, vector<1x256x27xbf16>
    %1 = vector.shape_cast %0 : vector<1x256x27xbf16> to vector<256x27xbf16>
    %c0_2 = arith.constant 0 : index
    %c0_3 = arith.constant 0 : index
    %2 = vector.load %arg3[%c0_2, %c0_3] : memref<27x128xbf16, #tpu.memory_space<vmem>>, vector<27x128xbf16>
    %cst = arith.constant dense<0.000000e+00> : vector<256x128xf32>
    %3 = tpu.matmul %1, %2, %cst {dimension_numbers = #tpu.dot_dimension_numbers<[1], [0], [0], [1], [0, 0, 1, 1], [], []>} : vector<256x27xbf16>, vector<27x128xbf16>, vector<256x128xf32> -> vector<256x128xf32>
    %c0_4 = arith.constant 0 : index
    %c0_5 = arith.constant 0 : index
    %4 = vector.load %arg4[%c0_4, %c0_5] : memref<1x128xf32, #tpu.memory_space<vmem>>, vector<1x128xf32>
    %5 = vector.broadcast %4 : vector<1x128xf32> to vector<256x128xf32>
    %6 = arith.mulf %3, %5 : vector<256x128xf32>
    %c0_6 = arith.constant 0 : index
    %c0_7 = arith.constant 0 : index
    %7 = vector.load %arg5[%c0_6, %c0_7] : memref<1x128xf32, #tpu.memory_space<vmem>>, vector<1x128xf32>
    %8 = vector.broadcast %7 : vector<1x128xf32> to vector<256x128xf32>
    %9 = arith.addf %6, %8 : vector<256x128xf32>
    %cst_8 = arith.constant 0.000000e+00 : f32
    %10 = vector.broadcast %cst_8 : f32 to vector<256x128xf32>
    %11 = arith.subf %10, %9 : vector<256x128xf32>
    %12 = math.exp %11 : vector<256x128xf32>
    %cst_9 = arith.constant 1.000000e+00 : f32
    %13 = vector.broadcast %cst_9 : f32 to vector<256x128xf32>
    %14 = arith.addf %13, %12 : vector<256x128xf32>
    %cst_10 = arith.constant 1.000000e+00 : f32
    %15 = vector.broadcast %cst_10 : f32 to vector<256x128xf32>
    %16 = arith.divf %15, %14 : vector<256x128xf32>
    %17 = arith.mulf %9, %16 : vector<256x128xf32>
    %18 = arith.truncf %17 : vector<256x128xf32> to vector<256x128xbf16>
    %c0_11 = arith.constant 0 : index
    %c0_12 = arith.constant 0 : index
    %c0_13 = arith.constant 0 : index
    %19 = vector.load %arg6[%c0_11, %c0_12, %c0_13] : memref<1x256x128xbf16, #tpu.memory_space<vmem>>, vector<1x256x128xbf16>
    %20 = vector.shape_cast %19 : vector<1x256x128xbf16> to vector<256x128xbf16>
    %21 = vector.shape_cast %18 : vector<256x128xbf16> to vector<1x256x128xbf16>
    tpu.vector_store %arg6[%c0_11, %c0_12, %c0_13], %21 {strides = array<i32>} : memref<1x256x128xbf16, #tpu.memory_space<vmem>>, vector<1x256x128xbf16>,
    return
  }
  func.func @transform_0(%arg0: i32, %arg1: i32) -> (i32, i32, i32) {
    %c0_i32 = arith.constant 0 : i32
    %c0_i32_0 = arith.constant 0 : i32
    return %arg0, %arg1, %c0_i32 : i32, i32, i32
  }
  func.func @transform_1(%arg0: i32, %arg1: i32) -> (i32, i32) {
    %c0_i32 = arith.constant 0 : i32
    %c0_i32_0 = arith.constant 0 : i32
    %c0_i32_1 = arith.constant 0 : i32
    return %c0_i32, %c0_i32_0 : i32, i32
  }
  func.func @transform_2(%arg0: i32, %arg1: i32) -> (i32, i32) {
    %c0_i32 = arith.constant 0 : i32
    %c0_i32_0 = arith.constant 0 : i32
    %c0_i32_1 = arith.constant 0 : i32
    return %c0_i32, %c0_i32_0 : i32, i32
  }
  func.func @transform_3(%arg0: i32, %arg1: i32) -> (i32, i32) {
    %c0_i32 = arith.constant 0 : i32
    %c0_i32_0 = arith.constant 0 : i32
    %c0_i32_1 = arith.constant 0 : i32
    return %c0_i32, %c0_i32_0 : i32, i32
  }
  func.func @transform_4(%arg0: i32, %arg1: i32) -> (i32, i32, i32) {
    %c0_i32 = arith.constant 0 : i32
    %c0_i32_0 = arith.constant 0 : i32
    return %arg0, %arg1, %c0_i32 : i32, i32, i32
  }
}

</mosaic_0001>

<bundles_post_ra>
// kernel: tpu_custom_call.1
= control target key start
LH: loop header
LB: loop body
LE: loop exit
PB: predicated region body
PF: predicated region fallthrough
CT: control target
= control target key end

     0   :  { %9 = vsyncpa [#allocation3], 0  ;;  %s2132_s0 = inlined_call_operand.vmem [shape: bf16[2,256,27], index: 0, kind: input, shape index: {}]   ;;  %s2133_s1 = inlined_call_operand.vmem [shape: bf16[27,128], index: 1, kind: input, shape index: {}]   ;;  %s2134_s2 = inlined_call_operand.vmem [shape: f32[1,128], index: 2, kind: input, shape index: {}]   ;;  %s2135_s3 = inlined_call_operand.vmem [shape: f32[1,128], index: 3, kind: input, shape index: {}]   ;;  %s2136_s4 = inlined_call_operand.hbm [shape: bf16[2,256,128], index: 4, kind: output, shape index: {}]  }
   0x1   :  { %11 = vsyncpa [#allocation3 + $0x1], 0  ;;  %s1710_s15 = smov 0   ;;  %s1712_s16 = smov 0  }
   0x2   :  { %s1714_s17 = smov 0   ;;  %s1716_s18 = smov 0  }
   0x3   :  { %s1718_s19 = smov 0   ;;  %s1720_s20 = smov 0  }
   0x4 LB: > { %s1129_s21 = sadd.s32 4294967295, %s1679_s20   ;;  %s1130_s22 = sadd.s32 4294967294, %s1679_s20   ;;  %s1679_s20 = sphi %s1720_s20, %s17_s20   ;;  %s1675_s19 = sphi %s1718_s19, %s2143_s19   ;;  %s1671_s18 = sphi %s1716_s18, %s2142_s18   ;;  %s1667_s17 = sphi %s1714_s17, %s2141_s17   ;;  %s1663_s16 = sphi %s1712_s16, %s2140_s16   ;;  %s1659_s15 = sphi %s1710_s15, %s2139_s15  }
   0x5   : > { %s29_s23 = sadd.s32 1, %s1675_s19  ;;  %s129_s24 = sadd.s32 1, %s1667_s17 }
   0x6   : > { %p31_p0 = scmp.ge.s32.totalorder %s29_s23, 2  ;;  %p139_p1 = scmp.ne.s32.totalorder %s1667_s17, %s1663_s16 }
   0x7   : > { %p140_p2 = scmp.eq.s32.totalorder %s1129_s21, 1  ;;  %p145_p3 = scmp.ne.s32.totalorder %s1663_s16, %s1659_s15 }
   0x8   : > { %s2145_s23 = smov (%p31_p0, %s29_s23), 0  ;;  %p146_p5 = scmp.eq.s32.totalorder %s1130_s22, 1 }
   0x9   : > { %p1750_p4 = por %p140_p2, %p139_p1  ;;  %s124_s26 = ssub.s32 %s1675_s19, %s2145_s23 }
   0xa   : > { %p1133_p6 = scmp.ge.s32.totalorder %s1679_s20, 1  ;;  %p127_p7 = scmp.eq.s32.totalorder %s124_s26, 0 }
   0xb   : > { %p1757_p8 = por %p146_p5, %p145_p3  ;;  %p186_p9 = scmp.lt.s32.totalorder %s1679_s20, 3 }
   0xc   : > { %s1763_s28 = scalar_select %p127_p7, %s1667_s17, %s129_s24  }
   0xd   : > { %p187_p10 = pnand %p1133_p6, %p186_p9 }
   0xe   : > { %v1455_v0 = vld [vmem:[%s2133_s1] sm:$0xff] (!%p187_p10)   ;;  %vm404_vm0 = vcmask (!%p187_p10), 1044480   ;;  %v1456_v1 = vld [vmem:[%s2133_s1 + $0x8] sm:$0x3f] (!%p187_p10)   ;;  %vm405_vm1 = vcmask (!%p187_p10), 1045504   ;;  %p217_p11 = scmp.lt.s32.totalorder (!%p187_p10), %s1671_s18, 1 }
   0xf   : > { %190 = sbr.rel (%p187_p10) target bundleno = 348 (0x15c), region = 36  ;;  %1357 = vmatprep.subr.bf16.mxu0 (!%p187_p10), %v1455_v0  ;;  %1393 = vmatprep.subr.bf16.mxu1 (!%p187_p10), %v1455_v0  ;;  %v1681_v2 = vmov (!%p187_p10), 65535   ;;  %vm355_vm2 = vcmask (!%p187_p10), 220160   ;;  %v1813_v22 = vld [vmem:[%s2134_s2] ss:$0 sm:$0xff] (!%p187_p10)  ;;  %s213_s22 = sand.u32 (!%p187_p10), 1, %s1663_s16  }
  0x10   : > { %1358 = vmatpush3.bf16.msra.mxu0 (!%p187_p10), %v1455_v0  ;;  %1395 = vmatpush3.bf16.msra.mxu1 (!%p187_p10), %v1455_v0  ;;  %v406_v3 = vsel (!%p187_p10), %vm404_vm0, 4294967295, %v1681_v2  ;;  %v1818_v24 = vld [vmem:[%s2135_s3] ss:$0 sm:$0xff] (!%p187_p10)  ;;  %s1134_s24 = sshll.u32 (!%p187_p10), %s213_s22, 7  ;;  %s1243_s29 = sshll.u32 (!%p187_p10), %s1671_s18, 11 }
  0x11   : > { %v407_v4 = vsel (!%p187_p10), %vm405_vm1, %v406_v3, 0  ;;  %s1984_s26 = scalar_lea.vmem (!%p187_p10), [#allocation2], %s1134_s24  ;;  %s1682_s9 = smov (!%p187_p10), [#allocation2]  }
  0x12   : > { %v409_v5 = vand.u32 (!%p187_p10), %v1456_v1, %v407_v4  ;;  %s1050_s30 = sshll.u32 (!%p187_p10), %s1984_s26, 4  ;;  %s1605_s10 = sshll.u32 (!%p187_p10), %s1682_s9, 4  ;;  %s2079_s30 = int_to_ptr.vmem [resolvable:$true] %s1050_s30  ;;  %s1606_s10 = int_to_ptr.vmem [resolvable:$false] %s1605_s10 }
  0x13   : > { %p1608_p1 = scmp.lt.s32.totalorder (!%p187_p10), %s2079_s30, %s1606_s10 }
  0x14   : > { %1359 = vmatprep.subr.bf16.mxu0 (!%p187_p10), %v409_v5  ;;  %1394 = vmatprep.subr.bf16.mxu1 (!%p187_p10), %v409_v5 }
  0x15   : > { %1360 = vmatpush3.bf16.msra.mxu0 (!%p187_p10), %v409_v5  ;;  %1396 = vmatpush3.bf16.msra.mxu1 (!%p187_p10), %v409_v5 }
  0x16   : > { %s218_s7 = scalar_select %p217_p11, %s1671_s18, 1 }
  0x17   : > { %s2077_s18 = scalar_lea.hbm %s2136_s4, %s1243_s29 }
  0x18   : > { %s1210_s8 = sshll.u32 %s218_s7, 7  ;;  %s2086_s7 = scalar_lea.sflag [#allocation3], %s213_s22 }
  0x19   : > { %s1776_s11 = scalar_lea.vmem %s2132_s0, %s1210_s8  ;;  %s1601_s8 = scalar_lea.vmem %s2079_s30, 2048 }
  0x1a   : > { %v1457_v6 = vld [vmem:[%s1776_s11] sm:$0xff]   ;;  %v1459_v8 = vld [vmem:[%s1776_s11 + $0x8] sm:$0xff]   ;;  %v1461_v10 = vld [vmem:[%s1776_s11 + $0x10] sm:$0xff]   ;;  %p1602_p12 = scmp.ne.s32.totalorder %s2079_s30, %s1601_s8 }
  0x1b   : > { %v1458_v7 = vld [vmem:[%s1776_s11 + $0x40] sm:$0xff]   ;;  %1361 = vmatprep.mubr.msk.bf16.mxu0 %vm355_vm2, %v1457_v6  ;;  %v1460_v9 = vld [vmem:[%s1776_s11 + $0x48] sm:$0xff]   ;;  %v1462_v11 = vld [vmem:[%s1776_s11 + $0x50] sm:$0xff]  }
  0x1c   : > { %1377 = vmatprep.mubr.msk.bf16.mxu1 %vm355_vm2, %v1458_v7  ;;  %1362 = vmatmul.mubr.msk.bf16.vlgmr.msra.gmra.mrb[0].mxu0 %vm355_vm2, %v1459_v8  ;;  %v1463_v12 = vld [vmem:[%s1776_s11 + $0x18] sm:$0xff]   ;;  %v1465_v14 = vld [vmem:[%s1776_s11 + $0x20] sm:$0xff]   ;;  %v1467_v16 = vld [vmem:[%s1776_s11 + $0x28] sm:$0xff]   ;;  %p1603_p13 = pnand %p1602_p12, %p1750_p4 }
  0x1d   : > { %1378 = vmatmul.mubr.msk.bf16.vlgmr.msra.gmra.mrb[0].mxu1 %vm355_vm2, %v1460_v9  ;;  %1365 = vmatprep.mubr.msk.bf16.mxu0 %vm355_vm2, %v1461_v10  ;;  %v1464_v13 = vld [vmem:[%s1776_s11 + $0x58] sm:$0xff]   ;;  %v1466_v15 = vld [vmem:[%s1776_s11 + $0x60] sm:$0xff]   ;;  %v1468_v17 = vld [vmem:[%s1776_s11 + $0x68] sm:$0xff]  }
  0x1e   : > { %1381 = vmatprep.mubr.msk.bf16.mxu1 %vm355_vm2, %v1462_v11  ;;  %v1469_v18 = vld [vmem:[%s1776_s11 + $0x30] sm:$0xff]   ;;  %v1471_v20 = vld [vmem:[%s1776_s11 + $0x38] sm:$0xff]   ;;  %p1604_p0 = pneg %p1603_p13 }
  0x1f   : > { %v1470_v19 = vld [vmem:[%s1776_s11 + $0x70] sm:$0xff]   ;;  %v1472_v21 = vld [vmem:[%s1776_s11 + $0x78] sm:$0xff]   ;;  %s1607_s11 = scalar_lea.vmem %s1606_s10, 4096 }
  0x20   : > { %p1609_p2 = scmp.lt.s32.totalorder %s1607_s11, %s1601_s8 }
  0x22   : > { %p1610_p3 = por %p1609_p2, %p1608_p1 }
  0x24   : > { %1366 = vmatmul.mubr.msk.bf16.gmra.mrb[4].mxu0 %vm355_vm2, %v1463_v12  ;;  %p1611_p5 = pnand %p1610_p3, %p1604_p0 }
  0x25   : > { %1382 = vmatmul.mubr.msk.bf16.gmra.mrb[4].mxu1 %vm355_vm2, %v1464_v13  ;;  %1369 = vmatprep.mubr.msk.bf16.mxu0 %vm355_vm2, %v1465_v14 }
  0x26   : > { %1385 = vmatprep.mubr.msk.bf16.mxu1 %vm355_vm2, %v1466_v15 }
  0x2c   : > { %1370 = vmatmul.mubr.msk.bf16.gmra.mrb[8].mxu0 %vm355_vm2, %v1467_v16 }
  0x2d   : > { %1386 = vmatmul.mubr.msk.bf16.gmra.mrb[8].mxu1 %vm355_vm2, %v1468_v17  ;;  %1373 = vmatprep.mubr.msk.bf16.mxu0 %vm355_vm2, %v1469_v18 }
  0x2e   : > { %1389 = vmatprep.mubr.msk.bf16.mxu1 %vm355_vm2, %v1470_v19 }
  0x34   : > { %1374 = vmatmul.mubr.msk.bf16.gmra.mrb[12].mxu0 %vm355_vm2, %v1471_v20 }
  0x35   : > { %1390 = vmatmul.mubr.msk.bf16.gmra.mrb[12].mxu1 %vm355_vm2, %v1472_v21 }
  0xef   : > { %v1363_v23 = vpop.f32.mrb[0].mxu0 }
  0xf0   : > { %v581_v25 = vmul.f32 %v1363_v23, %v1813_v22  ;;  %v1379_v26 = vpop.f32.mrb[0].mxu1  ;;  %v445_v27 = vpop.f32.mrb[1].mxu0 }
  0xf1   : > { %v597_v28 = vmul.f32 %v1379_v26, %v1813_v22  ;;  %v579_v29 = vmul.f32 %v1813_v22, %v445_v27  ;;  %v509_v30 = vpop.f32.mrb[1].mxu1  ;;  %v1364_v31 = vpop.f32.mrb[2].mxu0 }
  0xf2   : > { %v1824_v32 = vadd.f32 %v1818_v24, %v581_v25  ;;  %v595_v33 = vmul.f32 %v1813_v22, %v509_v30  ;;  %v582_v34 = vmul.f32 %v1364_v31, %v1813_v22  ;;  %v1380_v35 = vpop.f32.mrb[2].mxu1  ;;  %v448_v36 = vpop.f32.mrb[3].mxu0 }
  0xf3   : > { %v1829_v37 = vadd.f32 %v1818_v24, %v597_v28  ;;  %v1832_v38 = vadd.f32 %v1818_v24, %v579_v29  ;;  %v598_v39 = vmul.f32 %v1380_v35, %v1813_v22  ;;  %v580_v40 = vmul.f32 %v1813_v22, %v448_v36  ;;  %v512_v41 = vpop.f32.mrb[3].mxu1 }
  0xf4   : > { %v652_v42 = vsub.f32 0.0, %v1824_v32  ;;  %v1838_v43 = vadd.f32 %v1818_v24, %v595_v33  ;;  %v1841_v44 = vadd.f32 %v1818_v24, %v582_v34  ;;  %v596_v45 = vmul.f32 %v1813_v22, %v512_v41 }
  0xf5   : > { %v668_v46 = vsub.f32 0.0, %v1829_v37  ;;  %v650_v47 = vsub.f32 0.0, %v1832_v38  ;;  %v1847_v48 = vadd.f32 %v1818_v24, %v598_v39  ;;  %v1850_v49 = vadd.f32 %v1818_v24, %v580_v40 }
  0xf6   : > { %v686_v50 = vmul.f32 1.442695, %v652_v42  ;;  %v666_v51 = vsub.f32 0.0, %v1838_v43  ;;  %v653_v52 = vsub.f32 0.0, %v1841_v44  ;;  %v1855_v53 = vadd.f32 %v1818_v24, %v596_v45 }
  0xf7   : > { %v718_v54 = vmul.f32 1.442695, %v668_v46  ;;  %v682_v55 = vmul.f32 1.442695, %v650_v47  ;;  %v669_v56 = vsub.f32 0.0, %v1847_v48  ;;  %v651_v57 = vsub.f32 0.0, %v1850_v49 }
  0xf8   : > { %1473 = vpow2.f32 %v686_v50  ;;  %v714_v58 = vmul.f32 1.442695, %v666_v51  ;;  %v688_v59 = vmul.f32 1.442695, %v653_v52  ;;  %v667_v60 = vsub.f32 0.0, %v1855_v53  ;;  %v1367_v61 = vpop.f32.mrb[4].mxu0 }
  0xf9   : > { %1475 = vpow2.f32 %v718_v54  ;;  %v720_v62 = vmul.f32 1.442695, %v669_v56  ;;  %v684_v63 = vmul.f32 1.442695, %v651_v57  ;;  %v585_v0 = vmul.f32 %v1367_v61, %v1813_v22  ;;  %v1383_v1 = vpop.f32.mrb[4].mxu1  ;;  %v461_v2 = vpop.f32.mrb[5].mxu0 }
  0xfa   : > { %1477 = vpow2.f32 %v682_v55  ;;  %v716_v3 = vmul.f32 1.442695, %v667_v60  ;;  %v601_v4 = vmul.f32 %v1383_v1, %v1813_v22  ;;  %v583_v5 = vmul.f32 %v1813_v22, %v461_v2  ;;  %v525_v6 = vpop.f32.mrb[5].mxu1  ;;  %v1368_v7 = vpop.f32.mrb[6].mxu0 }
  0xfb   : > { %1479 = vpow2.f32 %v714_v58  ;;  %v1864_v8 = vadd.f32 %v1818_v24, %v585_v0  ;;  %v599_v9 = vmul.f32 %v1813_v22, %v525_v6  ;;  %v586_v10 = vmul.f32 %v1368_v7, %v1813_v22  ;;  %v1384_v11 = vpop.f32.mrb[6].mxu1  ;;  %v464_v12 = vpop.f32.mrb[7].mxu0 }
  0xfc   : > { %1481 = vpow2.f32 %v688_v59  ;;  %v1869_v13 = vadd.f32 %v1818_v24, %v601_v4  ;;  %v1872_v14 = vadd.f32 %v1818_v24, %v583_v5  ;;  %v602_v15 = vmul.f32 %v1384_v11, %v1813_v22  ;;  %v528_v16 = vpop.f32.mrb[7].mxu1 }
  0xfd   : > { %1483 = vpow2.f32 %v720_v62  ;;  %v656_v17 = vsub.f32 0.0, %v1864_v8  ;;  %v1877_v18 = vadd.f32 %v1818_v24, %v599_v9  ;;  %v1880_v19 = vadd.f32 %v1818_v24, %v586_v10 }
  0xfe   : > { %1485 = vpow2.f32 %v684_v63  ;;  %v672_v20 = vsub.f32 0.0, %v1869_v13  ;;  %v654_v21 = vsub.f32 0.0, %v1872_v14  ;;  %v1885_v23 = vadd.f32 %v1818_v24, %v602_v15 }
  0xff   : > { %1487 = vpow2.f32 %v716_v3  ;;  %v694_v25 = vmul.f32 1.442695, %v656_v17  ;;  %v670_v26 = vsub.f32 0.0, %v1877_v18  ;;  %v1371_v27 = vpop.f32.mrb[8].mxu0  ;;  %v584_v30 = vmul.f32 %v1813_v22, %v464_v12 }
 0x100   : > { %v726_v28 = vmul.f32 1.442695, %v672_v20  ;;  %v690_v29 = vmul.f32 1.442695, %v654_v21  ;;  %v1387_v31 = vpop.f32.mrb[8].mxu1  ;;  %v657_v34 = vsub.f32 0.0, %v1880_v19  ;;  %v600_v35 = vmul.f32 %v1813_v22, %v528_v16 }
 0x101   : > { %1489 = vpow2.f32 %v694_v25  ;;  %v722_v33 = vmul.f32 1.442695, %v670_v26  ;;  %v477_v36 = vpop.f32.mrb[9].mxu0  ;;  %v541_v39 = vpop.f32.mrb[9].mxu1  ;;  %v673_v41 = vsub.f32 0.0, %v1885_v23  ;;  %v1893_v42 = vadd.f32 %v1818_v24, %v584_v30 }
 0x102   : > { %v1474_v40 = vpop.eup %1473  ;;  %1491 = vpow2.f32 %v726_v28  ;;  %v589_v45 = vmul.f32 %v1371_v27, %v1813_v22  ;;  %v1372_v46 = vpop.f32.mrb[10].mxu0  ;;  %v1897_v52 = vadd.f32 %v1818_v24, %v600_v35  ;;  %v605_v54 = vmul.f32 %v1387_v31, %v1813_v22 }
 0x103   : > { %v1388_v47 = vpop.f32.mrb[10].mxu1  ;;  %v1476_v50 = vpop.eup %1475  ;;  %v748_v51 = vadd.f32 1.0, %v1474_v40  ;;  %1493 = vpow2.f32 %v690_v29  ;;  %v655_v59 = vsub.f32 0.0, %v1893_v42  ;;  %v696_v2 = vmul.f32 1.442695, %v657_v34 }
 0x104   : > { %v480_v55 = vpop.f32.mrb[11].mxu0  ;;  %v1900_v56 = vpop.f32.mrb[11].mxu1  ;;  %v764_v58 = vadd.f32 1.0, %v1476_v50  ;;  %1495 = vpow2.f32 %v722_v33  ;;  %v1904_v60 = vadd.f32 %v1818_v24, %v589_v45  ;;  %v1907_v63 = vadd.f32 %v1818_v24, %v605_v54 }
 0x105   : > { %v1478_v57 = vpop.eup %1477  ;;  %1497 = vrcp.f32 %v748_v51  ;;  %v1909_v3 = vmul.f32 1.442695, %v673_v41  ;;  %v1911_v6 = vmul.f32 1.442695, %v655_v59  ;;  %v671_v7 = vsub.f32 0.0, %v1897_v52 }
 0x106   : > { %v1480_v61 = vpop.eup %1479  ;;  %v746_v62 = vadd.f32 1.0, %v1478_v57  ;;  %1499 = vrcp.f32 %v764_v58  ;;  %v660_v12 = vsub.f32 0.0, %v1904_v60  ;;  %v587_v15 = vmul.f32 %v1813_v22, %v477_v36 }
 0x107   : > { %v1482_v0 = vpop.eup %1481  ;;  %v762_v1 = vadd.f32 1.0, %v1480_v61  ;;  %v1914_v9 = vpop.f32.mrb[12].mxu0  ;;  %v676_v25 = vsub.f32 0.0, %v1907_v63  ;;  %v603_v26 = vmul.f32 %v1813_v22, %v541_v39  ;;  %v590_v31 = vmul.f32 %v1372_v46, %v1813_v22 }
 0x108   : > { %v1484_v4 = vpop.eup %1483  ;;  %1501 = vrcp.f32 %v746_v62  ;;  %v749_v5 = vadd.f32 1.0, %v1482_v0  ;;  %v1918_v16 = vpop.f32.mrb[12].mxu1  ;;  %v1929_v30 = vadd.f32 %v1818_v24, %v587_v15  ;;  %v606_v39 = vmul.f32 %v1388_v47, %v1813_v22 }
 0x109   : > { %v1486_v10 = vpop.eup %1485  ;;  %1503 = vrcp.f32 %v762_v1  ;;  %v765_v11 = vadd.f32 1.0, %v1484_v4  ;;  %v1920_v17 = vpop.f32.mrb[13].mxu0  ;;  %v1937_v36 = vadd.f32 %v1818_v24, %v603_v26  ;;  %v588_v40 = vmul.f32 %v1813_v22, %v480_v55 }
 0x10a   : > { %v1488_v20 = vpop.eup %1487  ;;  %1505 = vrcp.f32 %v749_v5  ;;  %v747_v21 = vadd.f32 1.0, %v1486_v10  ;;  %v1924_v27 = vpop.f32.mrb[13].mxu1  ;;  %v658_v46 = vsub.f32 0.0, %v1929_v30  ;;  %v1945_v51 = vadd.f32 %v1818_v24, %v590_v31 }
 0x10b   : > { %v1926_v28 = vpop.f32.mrb[14].mxu0  ;;  %1507 = vrcp.f32 %v765_v11  ;;  %v763_v29 = vadd.f32 1.0, %v1488_v20  ;;  %v1932_v33 = vpop.f32.mrb[14].mxu1  ;;  %v674_v58 = vsub.f32 0.0, %v1937_v36  ;;  %v1949_v47 = vadd.f32 %v1818_v24, %v606_v39 }
 0x10c   : > { %v1934_v34 = vpop.f32.mrb[15].mxu0  ;;  %v1490_v35 = vpop.eup %1489  ;;  %1509 = vrcp.f32 %v747_v21  ;;  %v724_v61 = vmul.f32 1.442695, %v671_v7  ;;  %v661_v62 = vsub.f32 0.0, %v1945_v51  ;;  %v702_v4 = vmul.f32 1.442695, %v660_v12 }
 0x10d   : > { %v1941_v41 = vpop.f32.mrb[15].mxu1  ;;  %v1492_v45 = vpop.eup %1491  ;;  %1511 = vrcp.f32 %v763_v29  ;;  %v752_v50 = vadd.f32 1.0, %v1490_v35  ;;  %v677_v5 = vsub.f32 0.0, %v1949_v47  ;;  %v734_v10 = vmul.f32 1.442695, %v676_v25 }
 0x10e   : > { %v1494_v54 = vpop.eup %1493  ;;  %v768_v57 = vadd.f32 1.0, %v1492_v45  ;;  %1513 = vpow2.f32 %v696_v2  ;;  %v698_v11 = vmul.f32 1.442695, %v658_v46  ;;  %v1955_v15 = vadd.f32 %v1818_v24, %v588_v40 }
 0x10f   : > { %v1496_v55 = vpop.eup %1495  ;;  %1515 = vrcp.f32 %v752_v50  ;;  %v750_v59 = vadd.f32 1.0, %v1494_v54  ;;  %v730_v21 = vmul.f32 1.442695, %v674_v58  ;;  %v604_v26 = vmul.f32 %v1813_v22, %v1900_v56 }
 0x110   : > { %v1498_v0 = vpop.eup %1497  ;;  %1517 = vrcp.f32 %v768_v57  ;;  %v766_v1 = vadd.f32 1.0, %v1496_v55  ;;  %v704_v25 = vmul.f32 1.442695, %v661_v62  ;;  %v593_v31 = vmul.f32 %v1914_v9, %v1813_v22 }
 0x111   : > { %v1500_v2 = vpop.eup %1499  ;;  %1519 = vrcp.f32 %v750_v59  ;;  %v844_v7 = vmul.f32 %v1498_v0, %v1824_v32  ;;  %v736_v32 = vmul.f32 1.442695, %v677_v5  ;;  %v1969_v40 = vadd.f32 %v1818_v24, %v604_v26 }
 0x112   : > { %v1502_v20 = vpop.eup %1501  ;;  %1521 = vrcp.f32 %v766_v1  ;;  %v860_v12 = vmul.f32 %v1500_v2, %v1829_v37  ;;  %v659_v45 = vsub.f32 0.0, %v1955_v15  ;;  %v594_v26 = vmul.f32 %v1926_v28, %v1813_v22 }
 0x113   : > { %v1504_v29 = vpop.eup %1503  ;;  %1523 = vpow2.f32 %v1909_v3  ;;  %v842_v39 = vmul.f32 %v1502_v20, %v1832_v38  ;;  %v1974_v3 = vadd.f32 %v1818_v24, %v593_v31 }
 0x114   : > { %v1506_v35 = vpop.eup %1505  ;;  %1525 = vpow2.f32 %v1911_v6  ;;  %v858_v9 = vmul.f32 %v1504_v29, %v1838_v43  ;;  %v675_v6 = vsub.f32 0.0, %v1969_v40  ;;  %v609_v43 = vmul.f32 %v1918_v16, %v1813_v22 }
 0x115   : > { %v1508_v56 = vpop.eup %1507  ;;  %v845_v37 = vmul.f32 %v1506_v35, %v1841_v44  ;;  %1527 = vpow2.f32 %v724_v61  ;;  %v664_v44 = vsub.f32 0.0, %v1974_v3  ;;  %v700_v62 = vmul.f32 1.442695, %v659_v45 }
 0x116   : > { %v1510_v50 = vpop.eup %1509  ;;  %v861_v38 = vmul.f32 %v1508_v56, %v1847_v48  ;;  %1529 = vpow2.f32 %v702_v4  ;;  %v732_v1 = vmul.f32 1.442695, %v675_v6  ;;  %v1997_v2 = vadd.f32 %v1818_v24, %v609_v43 }
 0x117   : > { %v1512_v46 = vpop.eup %1511  ;;  %v1252_v54 = vpack.c.bf16 %v845_v37, %v844_v7  ;;  %v843_v57 = vmul.f32 %v1510_v50, %v1850_v49  ;;  %1531 = vpow2.f32 %v734_v10  ;;  %v710_v16 = vmul.f32 1.442695, %v664_v44 }
 0x118   : > { %v1514_v58 = vpop.eup %1513  ;;  %v1292_v55 = vpack.c.bf16 %v861_v38, %v860_v12  ;;  %v859_v59 = vmul.f32 %v1512_v46, %v1855_v53  ;;  %1533 = vpow2.f32 %v698_v11  ;;  %v591_v11 = vmul.f32 %v1813_v22, %v1920_v17 }
 0x119   : > { %v1516_v61 = vpop.eup %1515  ;;  %1324 = vst [vmem:[%s1984_s26 + $0x8] sm:$0xff] %v1252_v54   ;;  %v1247_v48 = vpack.c.bf16 %v843_v57, %v842_v39  ;;  %v753_v49 = vadd.f32 1.0, %v1514_v58  ;;  %1535 = vpow2.f32 %v730_v21  ;;  %v607_v21 = vmul.f32 %v1813_v22, %v1924_v27 }
 0x11a   : > { %v1987_v0 = vpop.eup %1517  ;;  %1332 = vst [vmem:[%s1984_s26 + $0x48] sm:$0xff] %v1292_v55   ;;  %v1287_v53 = vpack.c.bf16 %v859_v59, %v858_v9  ;;  %1537 = vpow2.f32 %v704_v25  ;;  %v680_v35 = vsub.f32 0.0, %v1997_v2  ;;  %v610_v17 = vmul.f32 %v1932_v33, %v1813_v22 }
 0x11b   : > { %v1990_v4 = vpop.eup %1519  ;;  %1248 = vst [vmem:[%s1984_s26] sm:$0xff] %v1247_v48   ;;  %1539 = vrcp.f32 %v753_v49  ;;  %v2010_v27 = vadd.f32 %v1818_v24, %v591_v11  ;;  %v2013_v45 = vadd.f32 %v1818_v24, %v607_v21  ;;  %v2016_v50 = vadd.f32 %v1818_v24, %v594_v26 }
 0x11c   : > { %v1993_v5 = vpop.eup %1521  ;;  %1331 = vst [vmem:[%s1984_s26 + $0x40] sm:$0xff] %v1287_v53   ;;  %1541 = vpow2.f32 %v736_v32  ;;  %v848_v32 = vmul.f32 %v1516_v61, %v1864_v8  ;;  %v592_v8 = vmul.f32 %v1813_v22, %v1934_v34  ;;  %v608_v38 = vmul.f32 %v1813_v22, %v1941_v41 }
 0x11d   : > { %v1524_v10 = vpop.eup %1523  ;;  %1543 = vpow2.f32 %v700_v62  ;;  %v742_v54 = vmul.f32 1.442695, %v680_v35  ;;  %v2023_v57 = vadd.f32 %v1818_v24, %v610_v17  ;;  %v662_v55 = vsub.f32 0.0, %v2010_v27 }
 0x11e   : > { %v1526_v20 = vpop.eup %1525  ;;  %v769_v7 = vadd.f32 1.0, %v1524_v10  ;;  %1545 = vpow2.f32 %v732_v1  ;;  %v2027_v59 = vadd.f32 %v1818_v24, %v592_v8  ;;  %v678_v22 = vsub.f32 0.0, %v2013_v45 }
 0x11f   : > { %v1528_v29 = vpop.eup %1527  ;;  %v751_v12 = vadd.f32 1.0, %v1526_v20  ;;  %1547 = vpow2.f32 %v710_v16  ;;  %v2032_v41 = vadd.f32 %v1818_v24, %v608_v38  ;;  %v665_v49 = vsub.f32 0.0, %v2016_v50 }
 0x120   : > { %v1530_v25 = vpop.eup %1529  ;;  %1549 = vrcp.f32 %v769_v7  ;;  %v767_v31 = vadd.f32 1.0, %v1528_v29  ;;  %v681_v16 = vsub.f32 0.0, %v2023_v57  ;;  %v706_v11 = vmul.f32 1.442695, %v662_v55 }
 0x121   : > { %v1532_v39 = vpop.eup %1531  ;;  %1551 = vrcp.f32 %v751_v12  ;;  %v756_v56 = vadd.f32 1.0, %v1530_v25  ;;  %v663_v20 = vsub.f32 0.0, %v2027_v59  ;;  %v738_v7 = vmul.f32 1.442695, %v678_v22 }
 0x122   : > { %v1534_v28 = vpop.eup %1533  ;;  %1553 = vrcp.f32 %v767_v31  ;;  %v772_v37 = vadd.f32 1.0, %v1532_v39  ;;  %v679_v21 = vsub.f32 0.0, %v2032_v41  ;;  %v864_v29 = vmul.f32 %v1987_v0, %v1869_v13 }
 0x123   : > { %v1536_v9 = vpop.eup %1535  ;;  %1555 = vrcp.f32 %v756_v56  ;;  %v754_v33 = vadd.f32 1.0, %v1534_v28  ;;  %v712_v25 = vmul.f32 1.442695, %v665_v49  ;;  %v846_v35 = vmul.f32 %v1990_v4, %v1872_v14 }
 0x124   : > { %v1538_v6 = vpop.eup %1537  ;;  %1557 = vrcp.f32 %v772_v37  ;;  %v770_v46 = vadd.f32 1.0, %v1536_v9  ;;  %v862_v17 = vmul.f32 %v1993_v5, %v1877_v18  ;;  %v740_v9 = vmul.f32 1.442695, %v679_v21 }
 0x125   : > { %v1540_v44 = vpop.eup %1539  ;;  %1559 = vrcp.f32 %v754_v33  ;;  %v757_v58 = vadd.f32 1.0, %v1538_v6 }
 0x126   : > { %v1542_v43 = vpop.eup %1541  ;;  %v849_v34 = vmul.f32 %v1540_v44, %v1880_v19  ;;  %1561 = vrcp.f32 %v770_v46 }
 0x127   : > { %v1544_v61 = vpop.eup %1543  ;;  %1563 = vrcp.f32 %v757_v58  ;;  %v773_v48 = vadd.f32 1.0, %v1542_v43 }
 0x128   : > { %v1546_v62 = vpop.eup %1545  ;;  %v1262_v53 = vpack.c.bf16 %v849_v34, %v848_v32  ;;  %v755_v1 = vadd.f32 1.0, %v1544_v61  ;;  %1565 = vpow2.f32 %v742_v54  ;;  %v744_v32 = vmul.f32 1.442695, %v681_v16 }
 0x129   : > { %v1548_v10 = vpop.eup %1547  ;;  %1567 = vrcp.f32 %v773_v48  ;;  %v771_v19 = vadd.f32 1.0, %v1546_v62 }
 0x12a   : > { %v1550_v24 = vpop.eup %1549  ;;  %1326 = vst [vmem:[%s1984_s26 + $0x18] sm:$0xff] %v1262_v53   ;;  %1569 = vrcp.f32 %v755_v1  ;;  %v760_v44 = vadd.f32 1.0, %v1548_v10 }
 0x12b   : > { %v1552_v26 = vpop.eup %1551  ;;  %v865_v12 = vmul.f32 %v1550_v24, %v1885_v23  ;;  %1571 = vrcp.f32 %v771_v19  ;;  %v708_v23 = vmul.f32 1.442695, %v663_v20 }
 0x12c   : > { %v1554_v31 = vpop.eup %1553  ;;  %v847_v39 = vmul.f32 %v1552_v26, %v1893_v42  ;;  %1573 = vpow2.f32 %v706_v11 }
 0x12d   : > { %v1556_v56 = vpop.eup %1555  ;;  %v1302_v28 = vpack.c.bf16 %v865_v12, %v864_v29  ;;  %v863_v13 = vmul.f32 %v1554_v31, %v1897_v52  ;;  %1575 = vpow2.f32 %v738_v7 }
 0x12e   : > { %v1558_v0 = vpop.eup %1557  ;;  %v1257_v37 = vpack.c.bf16 %v847_v39, %v846_v35  ;;  %1577 = vpow2.f32 %v712_v25  ;;  %v852_v52 = vmul.f32 %v1556_v56, %v1904_v60 }
 0x12f   : > { %v1560_v33 = vpop.eup %1559  ;;  %1334 = vst [vmem:[%s1984_s26 + $0x58] sm:$0xff] %v1302_v28   ;;  %v1297_v14 = vpack.c.bf16 %v863_v13, %v862_v17  ;;  %1579 = vpow2.f32 %v744_v32  ;;  %v868_v6 = vmul.f32 %v1558_v0, %v1907_v63 }
 0x130   : > { %v1562_v18 = vpop.eup %1561  ;;  %1325 = vst [vmem:[%s1984_s26 + $0x10] sm:$0xff] %v1257_v37   ;;  %1581 = vpow2.f32 %v708_v23  ;;  %v850_v55 = vmul.f32 %v1560_v33, %v1929_v30 }
 0x131   : > { %v1564_v42 = vpop.eup %1563  ;;  %1333 = vst [vmem:[%s1984_s26 + $0x50] sm:$0xff] %v1297_v14   ;;  %1583 = vpow2.f32 %v740_v9  ;;  %v866_v60 = vmul.f32 %v1562_v18, %v1937_v36 }
 0x132   : > { %v1566_v4 = vpop.eup %1565  ;;  %v853_v5 = vmul.f32 %v1564_v42, %v1945_v51  ;;  %1585 = vrcp.f32 %v760_v44 }
 0x133   : > { %v1568_v8 = vpop.eup %1567  ;;  %v776_v34 = vadd.f32 1.0, %v1566_v4 }
 0x134   : > { %v1570_v38 = vpop.eup %1569  ;;  %v1272_v46 = vpack.c.bf16 %v853_v5, %v852_v52  ;;  %v869_v54 = vmul.f32 %v1568_v8, %v1949_v47 }
 0x135   : > { %v1572_v58 = vpop.eup %1571  ;;  %v851_v43 = vmul.f32 %v1570_v38, %v1955_v15  ;;  %1587 = vrcp.f32 %v776_v34 }
 0x136   : > { %1328 = vst [vmem:[%s1984_s26 + $0x28] sm:$0xff] %v1272_v46   ;;  %v1312_v51 = vpack.c.bf16 %v869_v54, %v868_v6  ;;  %v867_v22 = vmul.f32 %v1572_v58, %v1969_v40  ;;  %v1574_v61 = vpop.eup %1573 }
 0x137   : > { %v1267_v63 = vpack.c.bf16 %v851_v43, %v850_v55  ;;  %v1576_v48 = vpop.eup %1575  ;;  %v758_v49 = vadd.f32 1.0, %v1574_v61 }
 0x138   : > { %1336 = vst [vmem:[%s1984_s26 + $0x68] sm:$0xff] %v1312_v51   ;;  %v1307_v47 = vpack.c.bf16 %v867_v22, %v866_v60  ;;  %v1578_v62 = vpop.eup %1577  ;;  %v774_v30 = vadd.f32 1.0, %v1576_v48 }
 0x139   : > { %1327 = vst [vmem:[%s1984_s26 + $0x20] sm:$0xff] %v1267_v63   ;;  %v1580_v15 = vpop.eup %1579  ;;  %1589 = vrcp.f32 %v758_v49  ;;  %v761_v36 = vadd.f32 1.0, %v1578_v62 }
 0x13a   : > { %1335 = vst [vmem:[%s1984_s26 + $0x60] sm:$0xff] %v1307_v47   ;;  %v1582_v53 = vpop.eup %1581  ;;  %1591 = vrcp.f32 %v774_v30  ;;  %v777_v1 = vadd.f32 1.0, %v1580_v15 }
 0x13b   : > { %v1584_v16 = vpop.eup %1583  ;;  %1593 = vrcp.f32 %v761_v36  ;;  %v759_v40 = vadd.f32 1.0, %v1582_v53 }
 0x13c   : > { %1595 = vrcp.f32 %v777_v1  ;;  %v775_v10 = vadd.f32 1.0, %v1584_v16  ;;  %v1586_v19 = vpop.eup %1585 }
 0x13d   : > { %1597 = vrcp.f32 %v759_v40  ;;  %v856_v26 = vmul.f32 %v1586_v19, %v1974_v3 }
 0x13e   : > { %1599 = vrcp.f32 %v775_v10 }
 0x13f   : > { %v1588_v11 = vpop.eup %1587 }
 0x140   : > { %v872_v25 = vmul.f32 %v1588_v11, %v1997_v2 }
 0x143   : > { %v1590_v20 = vpop.eup %1589 }
 0x144   : > { %v1592_v24 = vpop.eup %1591  ;;  %v854_v17 = vmul.f32 %v1590_v20, %v2010_v27 }
 0x145   : > { %v1594_v7 = vpop.eup %1593 }
 0x146   : > { %v1596_v21 = vpop.eup %1595  ;;  %v857_v29 = vmul.f32 %v1594_v7, %v2016_v50  ;;  %v870_v50 = vmul.f32 %v1592_v24, %v2013_v45 }
 0x147   : > { %v1598_v12 = vpop.eup %1597  ;;  %v873_v31 = vmul.f32 %v1596_v21, %v2023_v57 }
 0x148   : > { %v1600_v35 = vpop.eup %1599  ;;  %v1282_v39 = vpack.c.bf16 %v857_v29, %v856_v26  ;;  %v855_v3 = vmul.f32 %v1598_v12, %v2027_v59 }
 0x149   : > { %v1322_v32 = vpack.c.bf16 %v873_v31, %v872_v25  ;;  %v871_v56 = vmul.f32 %v1600_v35, %v2032_v41 }
 0x14a   : > { %1330 = vst [vmem:[%s1984_s26 + $0x38] sm:$0xff] %v1282_v39   ;;  %v1277_v2 = vpack.c.bf16 %v855_v3, %v854_v17 }
 0x14b   : > { %1338 = vst [vmem:[%s1984_s26 + $0x78] sm:$0xff] %v1322_v32   ;;  %v1317_v27 = vpack.c.bf16 %v871_v56, %v870_v50 }
 0x14c   : > { %1329 = vst [vmem:[%s1984_s26 + $0x30] sm:$0xff] %v1277_v2  }
 0x14d   : > { %1337 = vst [vmem:[%s1984_s26 + $0x70] sm:$0xff] %v1317_v27  }
 0x14e   : > { %1614 = shalt.err (!%p1611_p5)
}
 0x14f   : > { %s1615_s12 = scalar_lea.hbm %s2077_s18, 2048  ;;  %s1619_s21 = scalar_lea.hbm %s2136_s4, 4096 }
 0x150   : > { %p1616_p6 = scmp.ne.s32.totalorder %s2077_s18, %s1615_s12  ;;  %p1620_p10 = scmp.lt.u32.totalorder %s2077_s18, %s2136_s4 }
 0x151   : > { %p1621_p11 = scmp.lt.u32.totalorder %s1619_s21, %s1615_s12  ;;  %p1623_p13 = scmp.lt.u32.totalorder %s1615_s12, %s2077_s18 }
 0x152   : > { %p1617_p7 = pnand %p1616_p6, %p1750_p4 }
 0x153   : > { %p1622_p12 = por %p1621_p11, %p1620_p10 }
 0x154   : > { %p1618_p9 = pneg %p1617_p7 }
 0x155   : > { %p1624_p0 = por %p1623_p13, %p1622_p12 }
 0x157   : > { %p1625_p1 = pnand %p1624_p0, %p1618_p9 }
 0x159   : > { %1628 = shalt.err (!%p1625_p1)
}
 0x15a   : > { %s1683_s26 = smov 64   ;;  %s1684_s29 = smov 4  }
 0x15b   : > { %1397 = dma.vmem_to_hbm [thread:$0]  (%p1750_p4), %s2079_s30, 2048, %s2077_s18, %s2086_s7, %s1683_s26, %s1683_s26, %s1684_s29  }
 0x15c PF: > { %p1403_p2 = scmp.ge.s32.totalorder %s1679_s20, 2  ;;  %s1065_s5 = sand.u32 1, %s1659_s15  }
 0x15d   : > { %s1066_s6 = scalar_lea.sflag [#allocation3], %s1065_s5 }
 0x15e   : > { %p1400_p3 = pnand %p1403_p2, %p1757_p8 }
 0x160   : > { %1654 = dma.done.wait (!%p1400_p3), %s1066_s6, 2048  }
 0x161   : > { %1656 = vsyncadd (!%p1400_p3), %s1066_s6, 4294965248  ;;  %s17_s20 = sadd.s32 1, %s1679_s20   ;;  %s2139_s15 = smov %s1663_s16 }
 0x162   : > { %p14_p5 = scmp.ge.s32.totalorder %s17_s20, 4   ;;  %s2140_s16 = smov %s1667_s17 }
 0x163   : > { %s2141_s17 = smov %s1763_s28  ;;  %s2142_s18 = smov %s1675_s19 }
 0x164   : > { %s2143_s19 = smov %s2145_s23  ;;  %16 = sbr.rel (!%p14_p5) target bundleno = 4 (0x4), region = 71 }
 0x16b   :  { %1071 = vsyncpa [#allocation3], 1 }
 0x16c   :  { %1073 = vsyncpa [#allocation3 + $0x1], 1 }

</bundles_post_ra>
